<compile_context>
chip_gen: v7x
topology: tpu7x:2x2x1
jax: 0.10.0
libtpu: 0.0.40
codegen_flags: <defaults>
</compile_context>

<pallas_src>
import jax
import jax.numpy as jnp
from jax.experimental import pallas as pl
from jax.experimental.pallas import tpu as pltpu

_SUB_ROWS = 8  # sublane tile height


def _round_up(x, m):
    return ((x + m - 1) // m) * m


def _dw_conv_kernel(w_ref, base_ref, halo_ref, o_ref, win_ref):
    """Depthwise strided conv1d on phase-decomposed input.

    w_ref:    (K,)                       filter taps, SMEM scalars
    base_ref: (stride, rt, tt)           phase planes, current output tile
    halo_ref: (stride, rt, 128)          phase planes, right halo (next 128 lanes)
    o_ref:    (rt, tt)                   output tile
    win_ref:  (stride, rt, tt+128) VMEM  contiguous per-phase window scratch
    """
    stride, row_tile, tt = base_ref.shape
    ksize = w_ref.shape[0]

    # Assemble contiguous per-phase windows: [ base tile | 128-lane right halo ].
    win_ref[:, :, :tt] = base_ref[...]
    win_ref[:, :, tt:] = halo_ref[...]

    # Process 8 rows at a time so the f32 accumulator stays vreg-resident while
    # each tap is a contiguous lane load from VMEM.
    for r0 in range(0, row_tile, _SUB_ROWS):
        acc = None
        for k in range(ksize):                     # K is small & static -> unrolled
            p, o = k % stride, k // stride
            xk = win_ref[p, pl.ds(r0, _SUB_ROWS), pl.ds(o, tt)].astype(jnp.float32)
            term = xk * w_ref[k]                   # SMEM scalar * vreg MAC
            acc = term if acc is None else acc + term
        o_ref[pl.ds(r0, _SUB_ROWS), :] = acc.astype(o_ref.dtype)


def downsample1d(x, filt, *, pad_left, pad_right, stride,
                 row_block=64, time_block=2048):
    """x: (B, C, T); filt: (C, 1, K) depthwise filter (shared prototype per channel).

    Equivalent to: F.conv1d(F.pad(x, (pad_left, pad_right), mode='replicate'),
                            filt, stride=stride, groups=C)
    """
    B, C, T = x.shape
    K = filt.shape[-1]

    # Token2Wav / BigVGAN LowPassFilter1d expands a single prototype filter across
    # channels (filter.expand(C, -1, -1)) -> depthwise conv reduces to K shared taps.
    taps = jnp.asarray(filt, jnp.float32).reshape(C, K)[0]        # (K,)
    # TODO(synk): support genuinely per-channel taps (per-sublane weight rows).

    R = B * C
    T_pad = T + pad_left + pad_right
    T_out = (T_pad - K) // stride + 1

    # Tile sizes: rows in multiples of 8 (sublanes), output time in multiples of
    # 128 (lanes).  Defaults keep every block well under v7x's 32 MiB scoped VMEM.
    rt = min(row_block, _round_up(R, _SUB_ROWS))
    tt = min(time_block, _round_up(T_out, 128))
    R_pad = _round_up(R, rt)
    nT = pl.cdiv(T_out, tt)

    halo = 128
    assert (K - 1) // stride <= halo, "filter too long for a 128-lane halo block"

    T2 = (nT + 1) * tt            # per-phase time length (extra tile of slack for halo)
    total_in = stride * T2
    assert total_in >= T_pad

    # Single fused preprocessing pass: replicate pad + row pad + round-up, then
    # de-interleave time into `stride` contiguous phase planes so each tap k reads
    # phase (k % stride) at contiguous lane offset (k // stride).
    x2 = x.reshape(R, T)
    xp = jnp.pad(x2, ((0, R_pad - R), (pad_left, total_in - pad_left - T)),
                 mode="edge")
    xph = xp.reshape(R_pad, T2, stride).transpose(2, 0, 1)        # (stride, R_pad, T2)

    out_pad = pl.pallas_call(
        _dw_conv_kernel,
        out_shape=jax.ShapeDtypeStruct((R_pad, nT * tt), x.dtype),
        grid=(R_pad // rt, nT),
        in_specs=[
            pl.BlockSpec(memory_space=pltpu.MemorySpace.SMEM),          # taps
            pl.BlockSpec((stride, rt, tt), lambda i, j: (0, i, j)),     # base tile
            pl.BlockSpec((stride, rt, halo),                            # right halo
                         lambda i, j: (0, i, (j + 1) * (tt // halo))),
        ],
        out_specs=pl.BlockSpec((rt, tt), lambda i, j: (i, j)),
        scratch_shapes=[pltpu.VMEM((stride, rt, tt + halo), x.dtype)],
        compiler_params=pltpu.CompilerParams(
            dimension_semantics=("parallel", "parallel"),
            vmem_limit_bytes=32 * 1024 * 1024,
        ),
    )(taps, xph, xph)

    return out_pad[:R, :T_out].reshape(B, C, T_out)


def _reference(x, filt, *, pad_left, pad_right, stride):
    """Plain-JAX reference matching F.conv1d(groups=C) semantics."""
    C = x.shape[1]
    xpad = jnp.pad(x, ((0, 0), (0, 0), (pad_left, pad_right)), mode="edge")
    return jax.lax.conv_general_dilated(
        xpad,
        filt,                               # (C, 1, K) == (out_ch, in_ch/groups, K)
        window_strides=(stride,),
        padding="VALID",
        dimension_numbers=("NCH", "OIH", "NCH"),
        feature_group_count=C,
    )


if __name__ == "__main__":
    def run_case(B, C, T, K, stride, pad_l, pad_r):
        key = jax.random.PRNGKey(0)
        kx, kf = jax.random.split(key)
        x = jax.random.normal(kx, (B, C, T), dtype=jnp.float32)
        proto = jax.random.normal(kf, (1, 1, K), dtype=jnp.float32)
        proto = proto / jnp.sum(jnp.abs(proto))       # deterministic normalization
        filt = jnp.broadcast_to(proto, (C, 1, K))

        out = downsample1d(x, filt, pad_left=pad_l, pad_right=pad_r, stride=stride)
        out = jax.block_until_ready(out)

        ref = _reference(x, filt, pad_left=pad_l, pad_right=pad_r, stride=stride)
        assert out.shape == ref.shape, (out.shape, ref.shape)
        assert jnp.allclose(out, ref, atol=1e-5, rtol=1e-5), "mismatch vs reference"

    # Small LowPassFilter1d-style config (kernel_size=12, stride=2, pad 5/6).
    run_case(B=2, C=4, T=16, K=12, stride=2, pad_l=5, pad_r=6)
    # Ragged multi-tile case: exercises the time-tile grid, halo block and
    # output tail slicing.
    run_case(B=1, C=16, T=300, K=12, stride=2, pad_l=5, pad_r=6)

    print("KERNEL_OK")
</pallas_src>

<mosaic_0001>
module attributes {stable_mosaic.version = 11 : i64} {
  func.func @_dw_conv_kernel(%arg0: i32, %arg1: i32, %arg2: memref<12xf32, #tpu.memory_space<smem>>, %arg3: memref<2x8x128xf32, #tpu.memory_space<vmem>>, %arg4: memref<2x8x128xf32, #tpu.memory_space<vmem>>, %arg5: memref<8x128xf32, #tpu.memory_space<vmem>>, %arg6: memref<2x8x256xf32, #tpu.memory_space<vmem>>) attributes {dimension_semantics = [#tpu.dimension_semantics<parallel>, #tpu.dimension_semantics<parallel>], iteration_bounds = array<i64: 1, 1>, scalar_prefetch = 0 : i64, scratch_operands = 1 : i64, tpu.core_type = #tpu.core_type<tc>, window_params = [{transform_indices = @transform_0, window_bounds = array<i64: 12>}, {transform_indices = @transform_1, window_bounds = array<i64: 2, 8, 128>}, {transform_indices = @transform_2, window_bounds = array<i64: 2, 8, 128>}, {transform_indices = @transform_3, window_bounds = array<i64: 8, 128>}]} {
    %c0 = arith.constant 0 : index
    %c0_0 = arith.constant 0 : index
    %c0_1 = arith.constant 0 : index
    %0 = vector.load %arg3[%c0, %c0_0, %c0_1] : memref<2x8x128xf32, #tpu.memory_space<vmem>>, vector<2x8x128xf32>
    %c0_2 = arith.constant 0 : index
    %c0_3 = arith.constant 0 : index
    %c0_4 = arith.constant 0 : index
    %1 = vector.load %arg6[%c0_2, %c0_3, %c0_4] : memref<2x8x256xf32, #tpu.memory_space<vmem>>, vector<2x8x128xf32>
    tpu.vector_store %arg6[%c0_2, %c0_3, %c0_4], %0 {strides = array<i32>} : memref<2x8x256xf32, #tpu.memory_space<vmem>>, vector<2x8x128xf32>,
    %c0_5 = arith.constant 0 : index
    %c0_6 = arith.constant 0 : index
    %c0_7 = arith.constant 0 : index
    %2 = vector.load %arg4[%c0_5, %c0_6, %c0_7] : memref<2x8x128xf32, #tpu.memory_space<vmem>>, vector<2x8x128xf32>
    %c0_8 = arith.constant 0 : index
    %c0_9 = arith.constant 0 : index
    %c128 = arith.constant 128 : index
    %3 = vector.load %arg6[%c0_8, %c0_9, %c128] : memref<2x8x256xf32, #tpu.memory_space<vmem>>, vector<2x8x128xf32>
    tpu.vector_store %arg6[%c0_8, %c0_9, %c128], %2 {strides = array<i32>} : memref<2x8x256xf32, #tpu.memory_space<vmem>>, vector<2x8x128xf32>,
    %c0_10 = arith.constant 0 : index
    %c0_11 = arith.constant 0 : index
    %c0_12 = arith.constant 0 : index
    %4 = vector.load %arg6[%c0_10, %c0_11, %c0_12] : memref<2x8x256xf32, #tpu.memory_space<vmem>>, vector<1x8x128xf32>
    %5 = vector.shape_cast %4 : vector<1x8x128xf32> to vector<8x128xf32>
    %c0_13 = arith.constant 0 : index
    %6 = memref.load %arg2[%c0_13] : memref<12xf32, #tpu.memory_space<smem>>
    %7 = vector.broadcast %6 : f32 to vector<8x128xf32>
    %8 = arith.mulf %5, %7 : vector<8x128xf32>
    %c1 = arith.constant 1 : index
    %c0_14 = arith.constant 0 : index
    %c0_15 = arith.constant 0 : index
    %9 = vector.load %arg6[%c1, %c0_14, %c0_15] : memref<2x8x256xf32, #tpu.memory_space<vmem>>, vector<1x8x128xf32>
    %10 = vector.shape_cast %9 : vector<1x8x128xf32> to vector<8x128xf32>
    %c1_16 = arith.constant 1 : index
    %11 = memref.load %arg2[%c1_16] : memref<12xf32, #tpu.memory_space<smem>>
    %12 = vector.broadcast %11 : f32 to vector<8x128xf32>
    %13 = arith.mulf %10, %12 : vector<8x128xf32>
    %14 = arith.addf %8, %13 : vector<8x128xf32>
    %c0_17 = arith.constant 0 : index
    %c0_18 = arith.constant 0 : index
    %c1_19 = arith.constant 1 : index
    %15 = vector.load %arg6[%c0_17, %c0_18, %c1_19] : memref<2x8x256xf32, #tpu.memory_space<vmem>>, vector<1x8x128xf32>
    %16 = vector.shape_cast %15 : vector<1x8x128xf32> to vector<8x128xf32>
    %c2 = arith.constant 2 : index
    %17 = memref.load %arg2[%c2] : memref<12xf32, #tpu.memory_space<smem>>
    %18 = vector.broadcast %17 : f32 to vector<8x128xf32>
    %19 = arith.mulf %16, %18 : vector<8x128xf32>
    %20 = arith.addf %14, %19 : vector<8x128xf32>
    %c1_20 = arith.constant 1 : index
    %c0_21 = arith.constant 0 : index
    %c1_22 = arith.constant 1 : index
    %21 = vector.load %arg6[%c1_20, %c0_21, %c1_22] : memref<2x8x256xf32, #tpu.memory_space<vmem>>, vector<1x8x128xf32>
    %22 = vector.shape_cast %21 : vector<1x8x128xf32> to vector<8x128xf32>
    %c3 = arith.constant 3 : index
    %23 = memref.load %arg2[%c3] : memref<12xf32, #tpu.memory_space<smem>>
    %24 = vector.broadcast %23 : f32 to vector<8x128xf32>
    %25 = arith.mulf %22, %24 : vector<8x128xf32>
    %26 = arith.addf %20, %25 : vector<8x128xf32>
    %c0_23 = arith.constant 0 : index
    %c0_24 = arith.constant 0 : index
    %c2_25 = arith.constant 2 : index
    %27 = vector.load %arg6[%c0_23, %c0_24, %c2_25] : memref<2x8x256xf32, #tpu.memory_space<vmem>>, vector<1x8x128xf32>
    %28 = vector.shape_cast %27 : vector<1x8x128xf32> to vector<8x128xf32>
    %c4 = arith.constant 4 : index
    %29 = memref.load %arg2[%c4] : memref<12xf32, #tpu.memory_space<smem>>
    %30 = vector.broadcast %29 : f32 to vector<8x128xf32>
    %31 = arith.mulf %28, %30 : vector<8x128xf32>
    %32 = arith.addf %26, %31 : vector<8x128xf32>
    %c1_26 = arith.constant 1 : index
    %c0_27 = arith.constant 0 : index
    %c2_28 = arith.constant 2 : index
    %33 = vector.load %arg6[%c1_26, %c0_27, %c2_28] : memref<2x8x256xf32, #tpu.memory_space<vmem>>, vector<1x8x128xf32>
    %34 = vector.shape_cast %33 : vector<1x8x128xf32> to vector<8x128xf32>
    %c5 = arith.constant 5 : index
    %35 = memref.load %arg2[%c5] : memref<12xf32, #tpu.memory_space<smem>>
    %36 = vector.broadcast %35 : f32 to vector<8x128xf32>
    %37 = arith.mulf %34, %36 : vector<8x128xf32>
    %38 = arith.addf %32, %37 : vector<8x128xf32>
    %c0_29 = arith.constant 0 : index
    %c0_30 = arith.constant 0 : index
    %c3_31 = arith.constant 3 : index
    %39 = vector.load %arg6[%c0_29, %c0_30, %c3_31] : memref<2x8x256xf32, #tpu.memory_space<vmem>>, vector<1x8x128xf32>
    %40 = vector.shape_cast %39 : vector<1x8x128xf32> to vector<8x128xf32>
    %c6 = arith.constant 6 : index
    %41 = memref.load %arg2[%c6] : memref<12xf32, #tpu.memory_space<smem>>
    %42 = vector.broadcast %41 : f32 to vector<8x128xf32>
    %43 = arith.mulf %40, %42 : vector<8x128xf32>
    %44 = arith.addf %38, %43 : vector<8x128xf32>
    %c1_32 = arith.constant 1 : index
    %c0_33 = arith.constant 0 : index
    %c3_34 = arith.constant 3 : index
    %45 = vector.load %arg6[%c1_32, %c0_33, %c3_34] : memref<2x8x256xf32, #tpu.memory_space<vmem>>, vector<1x8x128xf32>
    %46 = vector.shape_cast %45 : vector<1x8x128xf32> to vector<8x128xf32>
    %c7 = arith.constant 7 : index
    %47 = memref.load %arg2[%c7] : memref<12xf32, #tpu.memory_space<smem>>
    %48 = vector.broadcast %47 : f32 to vector<8x128xf32>
    %49 = arith.mulf %46, %48 : vector<8x128xf32>
    %50 = arith.addf %44, %49 : vector<8x128xf32>
    %c0_35 = arith.constant 0 : index
    %c0_36 = arith.constant 0 : index
    %c4_37 = arith.constant 4 : index
    %51 = vector.load %arg6[%c0_35, %c0_36, %c4_37] : memref<2x8x256xf32, #tpu.memory_space<vmem>>, vector<1x8x128xf32>
    %52 = vector.shape_cast %51 : vector<1x8x128xf32> to vector<8x128xf32>
    %c8 = arith.constant 8 : index
    %53 = memref.load %arg2[%c8] : memref<12xf32, #tpu.memory_space<smem>>
    %54 = vector.broadcast %53 : f32 to vector<8x128xf32>
    %55 = arith.mulf %52, %54 : vector<8x128xf32>
    %56 = arith.addf %50, %55 : vector<8x128xf32>
    %c1_38 = arith.constant 1 : index
    %c0_39 = arith.constant 0 : index
    %c4_40 = arith.constant 4 : index
    %57 = vector.load %arg6[%c1_38, %c0_39, %c4_40] : memref<2x8x256xf32, #tpu.memory_space<vmem>>, vector<1x8x128xf32>
    %58 = vector.shape_cast %57 : vector<1x8x128xf32> to vector<8x128xf32>
    %c9 = arith.constant 9 : index
    %59 = memref.load %arg2[%c9] : memref<12xf32, #tpu.memory_space<smem>>
    %60 = vector.broadcast %59 : f32 to vector<8x128xf32>
    %61 = arith.mulf %58, %60 : vector<8x128xf32>
    %62 = arith.addf %56, %61 : vector<8x128xf32>
    %c0_41 = arith.constant 0 : index
    %c0_42 = arith.constant 0 : index
    %c5_43 = arith.constant 5 : index
    %63 = vector.load %arg6[%c0_41, %c0_42, %c5_43] : memref<2x8x256xf32, #tpu.memory_space<vmem>>, vector<1x8x128xf32>
    %64 = vector.shape_cast %63 : vector<1x8x128xf32> to vector<8x128xf32>
    %c10 = arith.constant 10 : index
    %65 = memref.load %arg2[%c10] : memref<12xf32, #tpu.memory_space<smem>>
    %66 = vector.broadcast %65 : f32 to vector<8x128xf32>
    %67 = arith.mulf %64, %66 : vector<8x128xf32>
    %68 = arith.addf %62, %67 : vector<8x128xf32>
    %c1_44 = arith.constant 1 : index
    %c0_45 = arith.constant 0 : index
    %c5_46 = arith.constant 5 : index
    %69 = vector.load %arg6[%c1_44, %c0_45, %c5_46] : memref<2x8x256xf32, #tpu.memory_space<vmem>>, vector<1x8x128xf32>
    %70 = vector.shape_cast %69 : vector<1x8x128xf32> to vector<8x128xf32>
    %c11 = arith.constant 11 : index
    %71 = memref.load %arg2[%c11] : memref<12xf32, #tpu.memory_space<smem>>
    %72 = vector.broadcast %71 : f32 to vector<8x128xf32>
    %73 = arith.mulf %70, %72 : vector<8x128xf32>
    %74 = arith.addf %68, %73 : vector<8x128xf32>
    %c0_47 = arith.constant 0 : index
    %c0_48 = arith.constant 0 : index
    %75 = vector.load %arg5[%c0_47, %c0_48] : memref<8x128xf32, #tpu.memory_space<vmem>>, vector<8x128xf32>
    tpu.vector_store %arg5[%c0_47, %c0_48], %74 {strides = array<i32>} : memref<8x128xf32, #tpu.memory_space<vmem>>, vector<8x128xf32>,
    return
  }
  func.func @transform_0(%arg0: i32, %arg1: i32) -> i32 {
    %c0_i32 = arith.constant 0 : i32
    %c0_i32_0 = arith.constant 0 : i32
    return %c0_i32 : i32
  }
  func.func @transform_1(%arg0: i32, %arg1: i32) -> (i32, i32, i32) {
    %c0_i32 = arith.constant 0 : i32
    %c0_i32_0 = arith.constant 0 : i32
    return %c0_i32, %arg0, %arg1 : i32, i32, i32
  }
  func.func @transform_2(%arg0: i32, %arg1: i32) -> (i32, i32, i32) {
    %c1_i32 = arith.constant 1 : i32
    %0 = arith.addi %arg1, %c1_i32 : i32
    %c1_i32_0 = arith.constant 1 : i32
    %1 = arith.muli %0, %c1_i32_0 : i32
    %c0_i32 = arith.constant 0 : i32
    %c0_i32_1 = arith.constant 0 : i32
    return %c0_i32, %arg0, %1 : i32, i32, i32
  }
  func.func @transform_3(%arg0: i32, %arg1: i32) -> (i32, i32) {
    %c0_i32 = arith.constant 0 : i32
    return %arg0, %arg1 : i32, i32
  }
}

</mosaic_0001>

<bundles_post_ra>
// kernel: tpu_custom_call.1
= control target key start
LH: loop header
LB: loop body
LE: loop exit
PB: predicated region body
PF: predicated region fallthrough
CT: control target
= control target key end

     0   :  { %8 = vsyncpa [#allocation6], 0  ;;  %s450_s0 = inlined_call_operand.hbm [shape: f32[12], index: 0, kind: input, shape index: {}]   ;;  %s451_s1 = inlined_call_operand.hbm [shape: f32[2,8,256], index: 1, kind: input, shape index: {}]   ;;  %s452_s2 = inlined_call_operand.hbm [shape: f32[2,8,256], index: 2, kind: input, shape index: {}]   ;;  %s453_s3 = inlined_call_operand.hbm [shape: f32[8,128], index: 3, kind: output, shape index: {}]  }
   0x1   :  { %9 = vsyncpa [#allocation4], 0 }
   0x2   :  { %10 = vsyncpa [#allocation9], 0 }
   0x3   :  { %11 = vsyncpa [#allocation5], 0  ;;  %s257_s14 = scalar_lea.hbm %s450_s0, 16 }
   0x4   :  { %p258_p0 = scmp.ne.s32.totalorder %s450_s0, %s257_s14  ;;  %p261_p1 = scmp.lt.u32.totalorder %s257_s14, %s450_s0 }
   0x6   :  { %p263_p2 = pnand %p261_p1, %p258_p0 }
   0x8   :  { %266 = shalt.err (!%p263_p2)
}
   0x9   :  { %s344_s19 = smov [#allocation3]   ;;  %s345_s22 = smov [#allocation7]  }
   0xa   :  { %19 = dma.hbm_to_smem %s450_s0, 16, %s344_s19, [#allocation6]  }
   0xb   :  { %s25_s23 = sshll.u32 %s345_s22, 4  ;;  %s267_s26 = scalar_lea.hbm %s451_s1, 256  ;;  %s26_s23 = int_to_ptr.vmem [resolvable:$true] %s25_s23 }
   0xc   :  { %p268_p3 = scmp.ne.s32.totalorder %s451_s1, %s267_s26  ;;  %s269_s4 = scalar_lea.hbm %s451_s1, 512 }
   0xd   :  { %p270_p4 = scmp.lt.u32.totalorder %s269_s4, %s267_s26  ;;  %p271_p5 = scmp.lt.u32.totalorder %s267_s26, %s451_s1 }
   0xf   :  { %p272_p6 = por %p271_p5, %p270_p4 }
  0x11   :  { %p273_p7 = pnand %p272_p6, %p268_p3 }
  0x13   :  { %276 = shalt.err (!%p273_p7)
}
  0x14   :  { %s277_s0 = scalar_lea.vmem %s26_s23, 256  ;;  %p282_p9 = scmp.lt.s32.totalorder %s26_s23, %s26_s23 }
  0x15   :  { %p278_p8 = scmp.ne.s32.totalorder %s26_s23, %s277_s0  ;;  %p283_p10 = scmp.lt.s32.totalorder %s277_s0, %s277_s0 }
  0x17   :  { %p284_p11 = por %p283_p10, %p282_p9 }
  0x19   :  { %p285_p12 = pnand %p284_p11, %p278_p8 }
  0x1b   :  { %288 = shalt.err (!%p285_p12)
}
  0x1c   :  { %s346_s7 = smov 256   ;;  %s347_s8 = smov 128  }
  0x1d   :  { %s348_s9 = smov 8   ;;  %s233_s14 = scalar_lea.hbm %s452_s2, 128 }
  0x1e   :  { %31 = dma.hbm_to_vmem [thread:$0]  %s451_s1, 256, %s26_s23, [#allocation4], %s346_s7, %s347_s8, %s348_s9  }
  0x1f   :  { %s349_s15 = smov [#allocation8]   ;;  %s313_s19 = scalar_lea.hbm %s452_s2, 384 }
  0x20   :  { %s40_s16 = sshll.u32 %s349_s15, 4  ;;  %p290_p13 = scmp.ne.s32.totalorder %s233_s14, %s313_s19  ;;  %s41_s16 = int_to_ptr.vmem [resolvable:$true] %s40_s16 }
  0x21   :  { %s291_s22 = scalar_lea.hbm %s452_s2, 512  ;;  %p292_p0 = scmp.lt.u32.totalorder %s233_s14, %s452_s2 }
  0x22   :  { %p293_p1 = scmp.lt.u32.totalorder %s291_s22, %s313_s19  ;;  %p295_p3 = scmp.lt.u32.totalorder %s313_s19, %s233_s14 }
  0x24   :  { %p294_p2 = por %p293_p1, %p292_p0 }
  0x26   :  { %p296_p4 = por %p295_p3, %p294_p2 }
  0x28   :  { %p297_p5 = pnand %p296_p4, %p290_p13 }
  0x2a   :  { %300 = shalt.err (!%p297_p5)
}
  0x2b   :  { %s301_s1 = scalar_lea.vmem %s41_s16, 256  ;;  %p306_p7 = scmp.lt.s32.totalorder %s41_s16, %s41_s16 }
  0x2c   :  { %p302_p6 = scmp.ne.s32.totalorder %s41_s16, %s301_s1  ;;  %p307_p8 = scmp.lt.s32.totalorder %s301_s1, %s301_s1 }
  0x2e   :  { %p308_p9 = por %p307_p8, %p306_p7 }
  0x30   :  { %p309_p10 = pnand %p308_p9, %p302_p6 }
  0x32   :  { %312 = shalt.err (!%p309_p10)
}
  0x33   :  { %46 = dma.hbm_to_vmem [thread:$0]  %s233_s14, 256, %s41_s16, [#allocation9], %s346_s7, %s347_s8, %s348_s9  }
  0x34   :  { %336 = dma.done.wait [#allocation6], 16  }
  0x35   :  { %337 = vsyncadd [#allocation6], 4294967280 }
  0x36   :  { %338 = dma.done.wait [#allocation4], 256  }
  0x37   :  { %339 = vsyncadd [#allocation4], 4294967040 }
  0x38   :  { %340 = dma.done.wait [#allocation9], 256  }
  0x39   :  { %341 = vsyncadd [#allocation9], 4294967040 }
  0x3a   :  { %56 = sfence }
  0x3b   :  { %s236_s2 = sld [smem:[#allocation3 + $0x3]]  ;;  %s235_s23 = sld [smem:[#allocation3 + $0x2]]  ;;  %v415_v0 = vld [vmem:[#allocation7 + $0x8] sm:$0xff]  ;;  %v417_v1 = vld [vmem:[#allocation7] sm:$0xff]  ;;  %v419_v2 = vld [vmem:[#allocation8 + $0x8] sm:$0xff]  ;;  %vm88_vm0 = vcmask 1039360  }
  0x3c   :  { %s237_s26 = sld [smem:[#allocation3 + $0x4]]  ;;  %s238_s27 = sld [smem:[#allocation3 + $0x5]]  ;;  %v62_v5 = vld [vmem:[#allocation8] sm:$0xff]  ;;  %vm117_vm1 = vcmask 1031168   ;;  %vm144_vm2 = vcmask 1022976   ;;  %vm171_vm3 = vcmask 1014784  }
  0x3d   :  { %s67_s28 = sld [smem:[#allocation3]]  ;;  %s234_s29 = sld [smem:[#allocation3 + $0x1]]  ;;  %vm198_vm4 = vcmask 1006592  }
  0x3e   :  { %s350_s30 = smov 127   ;;  %s239_s4 = sld [smem:[#allocation3 + $0x6]] }
  0x3f   :  { %s240_s5 = sld [smem:[#allocation3 + $0x7]]  ;;  %s351_s6 = smov 126  }
  0x40   :  { %s241_s0 = sld [smem:[#allocation3 + $0x8]]  ;;  %s242_s7 = sld [smem:[#allocation3 + $0x9]] }
  0x41   :  { %v95_v3 = vstv %s236_s2  ;;  %v79_v6 = vstv %s235_s23  ;;  %s352_s8 = smov 125   ;;  %s243_s9 = sld [smem:[#allocation3 + $0xa]] }
  0x42   :  { %v96_v4 = vmul.f32 %v95_v3, %v415_v0  ;;  %v80_v7 = vmul.f32 %v79_v6, %v417_v1  ;;  %v97_v8 = vmul.f32 %v95_v3, %v419_v2  ;;  %v81_v9 = vmul.f32 %v79_v6, %v62_v5  ;;  %s244_s10 = sld [smem:[#allocation3 + $0xb]]  ;;  %s353_s11 = smov 124  }
  0x43   :  { %v108_v10 = vstv %s237_s26  ;;  %v122_v13 = vstv %s238_s27  ;;  %v68_v14 = vstv %s67_s28  ;;  %v73_v15 = vstv %s234_s29  ;;  %s354_s12 = smov 123   ;;  %s355_s13 = smov [#allocation10]  }
  0x44   :  { %100 = vrot.lane.b32.xlu1 %v96_v4, %s350_s30  ;;  %84 = vrot.lane.b32.xlu0 %v80_v7, %s350_s30  ;;  %v110_v11 = vmul.f32 %v108_v10, %v62_v5  ;;  %v109_v12 = vmul.f32 %v108_v10, %v417_v1  ;;  %v74_v16 = vmul.f32 %v73_v15, %v415_v0  ;;  %v135_v20 = vstv %s239_s4  ;;  %s222_s14 = sshll.u32 %s355_s13, 4  ;;  %s223_s14 = int_to_ptr.vmem [resolvable:$true] %s222_s14 }
  0x45   :  { %v69_v17 = vmul.f32 %v68_v14, %v417_v1  ;;  %v124_v18 = vmul.f32 %v122_v13, %v419_v2  ;;  %v123_v19 = vmul.f32 %v122_v13, %v415_v0  ;;  %v137_v22 = vmul.f32 %v135_v20, %v62_v5  ;;  %s314_s15 = scalar_lea.vmem %s223_s14, 128  ;;  %p319_p12 = scmp.lt.s32.totalorder %s223_s14, %s223_s14 }
  0x46   :  { %v136_v23 = vmul.f32 %v135_v20, %v417_v1  ;;  %v149_v24 = vstv %s240_s5  ;;  %v162_v27 = vstv %s241_s0  ;;  %v176_v30 = vstv %s242_s7  ;;  %p315_p11 = scmp.ne.s32.totalorder %s223_s14, %s314_s15  ;;  %p320_p13 = scmp.lt.s32.totalorder %s314_s15, %s314_s15 }
  0x47   :  { %v75_v21 = vadd.f32 %v74_v16, %v69_v17  ;;  %v151_v25 = vmul.f32 %v149_v24, %v419_v2  ;;  %v150_v26 = vmul.f32 %v149_v24, %v415_v0  ;;  %v164_v28 = vmul.f32 %v162_v27, %v62_v5 }
  0x48   :  { %102 = vrot.lane.b32.xlu1 %v97_v8, %s350_s30  ;;  %86 = vrot.lane.b32.xlu0 %v81_v9, %s350_s30  ;;  %v163_v29 = vmul.f32 %v162_v27, %v417_v1  ;;  %v178_v31 = vmul.f32 %v176_v30, %v419_v2  ;;  %v177_v32 = vmul.f32 %v176_v30, %v415_v0  ;;  %v189_v33 = vstv %s243_s9  ;;  %p321_p0 = por %p320_p13, %p319_p12 }
  0x49   :  { %v191_v34 = vmul.f32 %v189_v33, %v62_v5  ;;  %v190_v35 = vmul.f32 %v189_v33, %v417_v1  ;;  %v203_v36 = vstv %s244_s10 }
  0x4a   :  { %v205_v37 = vmul.f32 %v203_v36, %v419_v2  ;;  %v204_v38 = vmul.f32 %v203_v36, %v415_v0  ;;  %p322_p1 = pnand %p321_p0, %p315_p11 }
  0x4c   :  { %115 = vrot.lane.b32.xlu1 %v110_v11, %s351_s6  ;;  %113 = vrot.lane.b32.xlu0 %v109_v12, %s351_s6 }
  0x50   :  { %129 = vrot.lane.b32.xlu1 %v124_v18, %s351_s6  ;;  %127 = vrot.lane.b32.xlu0 %v123_v19, %s351_s6 }
  0x54   :  { %142 = vrot.lane.b32.xlu1 %v137_v22, %s352_s8  ;;  %140 = vrot.lane.b32.xlu0 %v136_v23, %s352_s8 }
  0x58   :  { %156 = vrot.lane.b32.xlu1 %v151_v25, %s352_s8  ;;  %154 = vrot.lane.b32.xlu0 %v150_v26, %s352_s8 }
  0x5c   :  { %169 = vrot.lane.b32.xlu1 %v164_v28, %s353_s11  ;;  %167 = vrot.lane.b32.xlu0 %v163_v29, %s353_s11 }
  0x60   :  { %183 = vrot.lane.b32.xlu1 %v178_v31, %s353_s11  ;;  %181 = vrot.lane.b32.xlu0 %v177_v32, %s353_s11 }
  0x64   :  { %196 = vrot.lane.b32.xlu1 %v191_v34, %s354_s12  ;;  %194 = vrot.lane.b32.xlu0 %v190_v35, %s354_s12 }
  0x68   :  { %210 = vrot.lane.b32.xlu1 %v205_v37, %s354_s12  ;;  %208 = vrot.lane.b32.xlu0 %v204_v38, %s354_s12 }
  0xb6   :  { %v101_v39 = vpop.permute.xlu1 %100  ;;  %v85_v40 = vpop.permute.xlu0 %84 }
  0xba   :  { %v103_v41 = vpop.permute.xlu1 %102  ;;  %v87_v42 = vpop.permute.xlu0 %86 }
  0xbb   :  { %v89_v47 = vsel %vm88_vm0, %v85_v40, %v87_v42  ;;  %v104_v51 = vsel %vm88_vm0, %v101_v39, %v103_v41 }
  0xbc   :  { %v91_v49 = vadd.f32 %v89_v47, %v75_v21 }
  0xbe   :  { %v116_v43 = vpop.permute.xlu1 %115  ;;  %v114_v44 = vpop.permute.xlu0 %113  ;;  %v106_v53 = vadd.f32 %v104_v51, %v91_v49 }
  0xbf   :  { %v118_v55 = vsel %vm117_vm1, %v114_v44, %v116_v43 }
  0xc0   :  { %v120_v58 = vadd.f32 %v118_v55, %v106_v53 }
  0xc2   :  { %v130_v45 = vpop.permute.xlu1 %129  ;;  %v128_v46 = vpop.permute.xlu0 %127 }
  0xc3   :  { %v131_v56 = vsel %vm117_vm1, %v128_v46, %v130_v45 }
  0xc4   :  { %v133_v61 = vadd.f32 %v131_v56, %v120_v58 }
  0xc6   :  { %v143_v48 = vpop.permute.xlu1 %142  ;;  %v141_v50 = vpop.permute.xlu0 %140 }
  0xc7   :  { %v145_v60 = vsel %vm144_vm2, %v141_v50, %v143_v48 }
  0xc8   :  { %v147_v0 = vadd.f32 %v145_v60, %v133_v61 }
  0xca   :  { %v157_v52 = vpop.permute.xlu1 %156  ;;  %v155_v54 = vpop.permute.xlu0 %154 }
  0xcb   :  { %v158_v62 = vsel %vm144_vm2, %v155_v54, %v157_v52 }
  0xcc   :  { %v160_v3 = vadd.f32 %v158_v62, %v147_v0 }
  0xce   :  { %v170_v57 = vpop.permute.xlu1 %169  ;;  %v168_v59 = vpop.permute.xlu0 %167 }
  0xcf   :  { %v172_v2 = vsel %vm171_vm3, %v168_v59, %v170_v57 }
  0xd0   :  { %v174_v6 = vadd.f32 %v172_v2, %v160_v3 }
  0xd2   :  { %v184_v63 = vpop.permute.xlu1 %183  ;;  %v182_v1 = vpop.permute.xlu0 %181 }
  0xd3   :  { %v185_v4 = vsel %vm171_vm3, %v182_v1, %v184_v63 }
  0xd4   :  { %v187_v9 = vadd.f32 %v185_v4, %v174_v6 }
  0xd6   :  { %v197_v5 = vpop.permute.xlu1 %196  ;;  %v195_v7 = vpop.permute.xlu0 %194 }
  0xd7   :  { %v199_v8 = vsel %vm198_vm4, %v195_v7, %v197_v5 }
  0xd8   :  { %v201_v11 = vadd.f32 %v199_v8, %v187_v9 }
  0xda   :  { %v211_v10 = vpop.permute.xlu1 %210  ;;  %v209_v12 = vpop.permute.xlu0 %208 }
  0xdb   :  { %v212_v13 = vsel %vm198_vm4, %v209_v12, %v211_v10 }
  0xdc   :  { %v214_v14 = vadd.f32 %v212_v13, %v201_v11 }
  0xde   :  { %215 = vst [vmem:[#allocation10] sm:$0xff] %v214_v14 }
  0xdf   :  { %325 = shalt.err (!%p322_p1)
}
  0xe0   :  { %s326_s18 = scalar_lea.hbm %s453_s3, 128 }
  0xe1   :  { %p327_p2 = scmp.ne.s32.totalorder %s453_s3, %s326_s18  ;;  %p330_p3 = scmp.lt.u32.totalorder %s326_s18, %s453_s3 }
  0xe3   :  { %p332_p4 = pnand %p330_p3, %p327_p2 }
  0xe5   :  { %335 = shalt.err (!%p332_p4)
}
  0xe6   :  { %225 = dma.vmem_to_hbm [thread:$0]  %s223_s14, 128, %s453_s3, [#allocation5]  }
  0xe7   :  { %342 = dma.done.wait [#allocation5], 128  }
  0xe8   :  { %343 = vsyncadd [#allocation5], 4294967168 }
  0xe9   :  { %229 = vsyncpa [#allocation4], 1 }
  0xea   :  { %230 = vsyncpa [#allocation9], 1 }
  0xeb   :  { %231 = vsyncpa [#allocation5], 1 }
  0xec   :  { %232 = vsyncpa [#allocation6], 1 }

</bundles_post_ra>
